<compile_context>
chip_gen: v6e
topology: v6e:2x2x1
jax: 0.10.0
libtpu: 0.0.40
codegen_flags: <defaults>
</compile_context>

<pallas_src>
import jax
import jax.numpy as jnp
from jax import lax
from jax.experimental import pallas as pl
from jax.experimental.pallas import tpu as pltpu


# ------------------------------ fused kernel body ------------------------------
def _erf(x):
    # Abramowitz & Stegun 7.1.26, |error| <= 1.5e-7: matches torch's exact-erf
    # GELU to fp32 noise using only Mosaic-friendly ops (exp/mul/add/where).
    a1, a2, a3, a4, a5 = 0.254829592, -0.284496736, 1.421413741, -1.453152027, 1.061405429
    p = 0.3275911
    s = jnp.where(x >= 0, 1.0, -1.0)
    z = jnp.abs(x)
    t = 1.0 / (1.0 + p * z)
    poly = ((((a5 * t + a4) * t + a3) * t + a2) * t + a1) * t
    return s * (1.0 - poly * jnp.exp(-z * z))


def _fused_kernel(x_ref, pt_ref, w1_ref, b1_ref, w2_ref, b2_ref, o_ref):
    """One (B_TILE*C, HWp) row-tile: pool-residual + ConvMlp-residual."""
    x = x_ref[...].astype(jnp.bfloat16)                               # (R, HWp)

    # ---- stage 1: x + Pooling(x) == avgpool(x); separable pool folded into pt.
    # Single-pass bf16 MXU matmul with f32 accumulation.
    pooled = jnp.dot(x, pt_ref[...], preferred_element_type=jnp.float32)

    # ---- stage 2: + ConvMlp: 1x1 convs (eval BN folded, block-diagonal across
    # the batch tile), exact-erf GELU.  Elementwise math stays f32 (v5e VPU).
    h = jnp.dot(w1_ref[...], pooled.astype(jnp.bfloat16),
                preferred_element_type=jnp.float32) + b1_ref[...]     # (BT*hid, HWp)
    g = h * (1.0 + _erf(h * 0.7071067811865476))     # GELU; 0.5 folded into w2
    y = jnp.dot(w2_ref[...], g.astype(jnp.bfloat16),
                preferred_element_type=jnp.float32) + b2_ref[...]     # (R, HWp)

    o_ref[...] = (pooled + y).astype(o_ref.dtype)                     # residual


# --------------------------------- host wrapper ---------------------------------
def _avg_matrix(n, pool_size):
    """1-D avg-pool (stride 1, same pad, count_include_pad=False) as a matrix."""
    idx = jnp.arange(n)
    half = pool_size // 2
    mask = (jnp.abs(idx[:, None] - idx[None, :]) <= half).astype(jnp.float32)
    cnt = mask.sum(axis=1, keepdims=True)          # valid (in-image) tap count
    return mask / cnt                              # (n, n)


def _pick_batch_tile(n, c):
    """Fill MXU rows / f32 sublanes: B_TILE*C a multiple of 8 and up to ~256
    rows, capped at 16 (block-diagonal conv weights grow ~BT^2).  At tiny N we
    prefer a full sublane tile over extra grid steps."""
    cap = max(1, min(n, 256 // max(c, 1), 16))
    best = None
    for bt in range(cap, 0, -1):
        if n % bt:
            continue
        if best is None:
            best = bt
        if (bt * c) % 8 == 0:
            return bt
    return best or 1


def meta_block_4d(x, params, pool_size=3):
    """x + Pooling(x), then + ConvMlp(...), for NCHW x (eval-mode BN folded)."""
    assert pool_size % 2 == 1, "pool-matrix construction assumes odd pool_size"
    n, c, h, w = x.shape
    hw = h * w
    hw_p = ((hw + 127) // 128) * 128      # lane-dense stores (no-op for 16x16)
    hid = params["w1"].shape[0]
    eps = 1e-5
    bt = _pick_batch_tile(n, c)
    rows = bt * c

    # Separable avg-pool combined into one (HW, HW) matrix (transposed so
    # pooled = X(R,HW) @ pt); bf16 for single-pass MXU + half the VMEM bytes.
    ah = _avg_matrix(h, pool_size)
    aw = _avg_matrix(w, pool_size)
    pt = jnp.kron(ah, aw).T
    pt = jnp.pad(pt, ((0, hw_p - hw), (0, hw_p - hw))).astype(jnp.bfloat16)

    # Fold eval-mode BatchNorm into the 1x1 convs; fold GELU's 0.5 into w2;
    # replicate block-diagonally across the batch tile so the whole tile is one
    # plain 2-D matmul (no in-kernel reshape / transpose).
    s1 = params["bn1_gamma"] / jnp.sqrt(params["bn1_var"] + eps)
    w1 = params["w1"][:, :, 0, 0] * s1[:, None]                          # (hid, C)
    b1 = (params["b1"] - params["bn1_mean"]) * s1 + params["bn1_beta"]   # (hid,)
    s2 = params["bn2_gamma"] / jnp.sqrt(params["bn2_var"] + eps)
    w2 = 0.5 * params["w2"][:, :, 0, 0] * s2[:, None]                    # (C, hid)
    b2 = (params["b2"] - params["bn2_mean"]) * s2 + params["bn2_beta"]   # (C,)

    eye = jnp.eye(bt, dtype=jnp.float32)
    w1_bd = jnp.kron(eye, w1).astype(jnp.bfloat16)        # (BT*hid, BT*C)
    w2_bd = jnp.kron(eye, w2).astype(jnp.bfloat16)        # (BT*C, BT*hid)
    b1_bd = jnp.tile(b1, bt).reshape(bt * hid, 1)         # f32, lane-broadcast
    b2_bd = jnp.tile(b2, bt).reshape(bt * c, 1)

    # NCHW -> (N*C, HW) is a free contiguous reshape; pad pixels to 128 lanes.
    xr = jnp.pad(x.reshape(n * c, hw), ((0, 0), (0, hw_p - hw)))

    cost = pl.CostEstimate(
        flops=2 * n * c * hw * hw + 4 * n * hid * c * hw,
        transcendentals=n * hid * hw,
        bytes_accessed=2 * n * c * hw_p * 4 + hw_p * hw_p * 2
        + 2 * bt * bt * hid * c * 2 + (bt * hid + bt * c) * 4,
    )

    out = pl.pallas_call(
        _fused_kernel,
        out_shape=jax.ShapeDtypeStruct((n * c, hw_p), x.dtype),
        grid=(n // bt,),
        in_specs=[
            pl.BlockSpec((rows, hw_p), lambda i: (i, 0)),        # activations
            pl.BlockSpec((hw_p, hw_p), lambda i: (0, 0)),        # pool matrix
            pl.BlockSpec((bt * hid, rows), lambda i: (0, 0)),    # fc1 (BN folded)
            pl.BlockSpec((bt * hid, 1), lambda i: (0, 0)),       # fc1 bias
            pl.BlockSpec((rows, bt * hid), lambda i: (0, 0)),    # fc2 (BN+0.5 folded)
            pl.BlockSpec((rows, 1), lambda i: (0, 0)),           # fc2 bias
        ],
        out_specs=pl.BlockSpec((rows, hw_p), lambda i: (i, 0)),
        compiler_params=pltpu.CompilerParams(
            dimension_semantics=("parallel",)),                  # megacore over tiles
        cost_estimate=cost,
    )(xr, pt, w1_bd, b1_bd, w2_bd, b2_bd)

    return out[:, :hw].reshape(n, c, h, w)


# ------------------------------- parameter setup -------------------------------
def init_params(key, dim, hidden):
    ks = jax.random.split(key, 10)
    return {
        "w1": 0.2 * jax.random.normal(ks[0], (hidden, dim, 1, 1), jnp.float32),
        "b1": 0.1 * jax.random.normal(ks[1], (hidden,), jnp.float32),
        "bn1_gamma": 1.0 + 0.1 * jax.random.normal(ks[2], (hidden,), jnp.float32),
        "bn1_beta": 0.1 * jax.random.normal(ks[3], (hidden,), jnp.float32),
        "bn1_mean": 0.1 * jax.random.normal(ks[4], (hidden,), jnp.float32),
        "bn1_var": jax.random.uniform(ks[5], (hidden,), jnp.float32, 0.5, 1.5),
        "w2": 0.2 * jax.random.normal(ks[6], (dim, hidden, 1, 1), jnp.float32),
        "b2": 0.1 * jax.random.normal(ks[7], (dim,), jnp.float32),
        "bn2_gamma": 1.0 + 0.1 * jax.random.normal(ks[8], (dim,), jnp.float32),
        "bn2_beta": 0.1 * jax.random.normal(ks[9], (dim,), jnp.float32),
        "bn2_mean": jnp.zeros((dim,), jnp.float32),
        "bn2_var": jnp.ones((dim,), jnp.float32),
    }


# ------------------------------ pure-JAX reference ------------------------------
def ref_forward(x, params, pool_size=3):
    eps = 1e-5
    pad = pool_size // 2
    padding = ((0, 0), (0, 0), (pad, pad), (pad, pad))
    sums = lax.reduce_window(x, 0.0, lax.add, (1, 1, pool_size, pool_size),
                             (1, 1, 1, 1), padding)
    cnts = lax.reduce_window(jnp.ones_like(x), 0.0, lax.add,
                             (1, 1, pool_size, pool_size), (1, 1, 1, 1), padding)
    x = x + (sums / cnts - x)

    def bn(y, g, b, m, v):
        inv = (g / jnp.sqrt(v + eps))[None, :, None, None]
        return (y - m[None, :, None, None]) * inv + b[None, :, None, None]

    h = jnp.einsum("nchw,oc->nohw", x, params["w1"][:, :, 0, 0],
                   precision=lax.Precision.HIGHEST) + params["b1"][None, :, None, None]
    h = bn(h, params["bn1_gamma"], params["bn1_beta"], params["bn1_mean"], params["bn1_var"])
    h = jax.nn.gelu(h, approximate=False)
    y = jnp.einsum("nchw,oc->nohw", h, params["w2"][:, :, 0, 0],
                   precision=lax.Precision.HIGHEST) + params["b2"][None, :, None, None]
    y = bn(y, params["bn2_gamma"], params["bn2_beta"], params["bn2_mean"], params["bn2_var"])
    return x + y


if __name__ == "__main__":
    key = jax.random.PRNGKey(0)
    kx, kp = jax.random.split(key)
    N, C, H, W = 2, 4, 16, 16
    EXP = 4
    x = jax.random.normal(kx, (N, C, H, W), jnp.float32)
    params = init_params(kp, C, C * EXP)

    out = jax.block_until_ready(meta_block_4d(x, params))
    ref = jax.block_until_ready(ref_forward(x, params))

    assert out.shape == (N, C, H, W) and out.dtype == jnp.float32
    # Single-pass bf16 MXU matmuls (f32 accumulation) vs. an all-f32 HIGHEST
    # reference: expected max abs deviation is a few 1e-3 for O(1) activations.
    err = float(jnp.max(jnp.abs(out - ref)))
    assert err < 1e-2, f"max abs err {err}"
    print("KERNEL_OK")
</pallas_src>

<mosaic_0001>
module attributes {stable_mosaic.version = 11 : i64} {
  func.func @_fused_kernel(%arg0: i32, %arg1: memref<8x256xf32, #tpu.memory_space<vmem>>, %arg2: memref<256x256xbf16, #tpu.memory_space<vmem>>, %arg3: memref<32x8xbf16, #tpu.memory_space<vmem>>, %arg4: memref<32x1xf32, #tpu.memory_space<vmem>>, %arg5: memref<8x32xbf16, #tpu.memory_space<vmem>>, %arg6: memref<8x1xf32, #tpu.memory_space<vmem>>, %arg7: memref<8x256xf32, #tpu.memory_space<vmem>>) attributes {dimension_semantics = [#tpu.dimension_semantics<parallel>], iteration_bounds = array<i64: 1>, scalar_prefetch = 0 : i64, scratch_operands = 0 : i64, tpu.core_type = #tpu.core_type<tc>, window_params = [{transform_indices = @transform_0, window_bounds = array<i64: 8, 256>}, {pipeline_mode = #tpu.pipeline_mode<synchronous>, transform_indices = @transform_1, window_bounds = array<i64: 256, 256>}, {pipeline_mode = #tpu.pipeline_mode<synchronous>, transform_indices = @transform_2, window_bounds = array<i64: 32, 8>}, {pipeline_mode = #tpu.pipeline_mode<synchronous>, transform_indices = @transform_3, window_bounds = array<i64: 32, 1>}, {pipeline_mode = #tpu.pipeline_mode<synchronous>, transform_indices = @transform_4, window_bounds = array<i64: 8, 32>}, {pipeline_mode = #tpu.pipeline_mode<synchronous>, transform_indices = @transform_5, window_bounds = array<i64: 8, 1>}, {transform_indices = @transform_6, window_bounds = array<i64: 8, 256>}]} {
    %c0 = arith.constant 0 : index
    %c0_0 = arith.constant 0 : index
    %0 = vector.load %arg1[%c0, %c0_0] : memref<8x256xf32, #tpu.memory_space<vmem>>, vector<8x256xf32>
    %1 = arith.truncf %0 : vector<8x256xf32> to vector<8x256xbf16>
    %c0_1 = arith.constant 0 : index
    %c0_2 = arith.constant 0 : index
    %2 = vector.load %arg2[%c0_1, %c0_2] : memref<256x256xbf16, #tpu.memory_space<vmem>>, vector<256x256xbf16>
    %cst = arith.constant dense<0.000000e+00> : vector<8x256xf32>
    %3 = tpu.matmul %1, %2, %cst {dimension_numbers = #tpu.dot_dimension_numbers<[1], [0], [0], [1], [0, 0, 1, 1], [], []>} : vector<8x256xbf16>, vector<256x256xbf16>, vector<8x256xf32> -> vector<8x256xf32>
    %c0_3 = arith.constant 0 : index
    %c0_4 = arith.constant 0 : index
    %4 = vector.load %arg3[%c0_3, %c0_4] : memref<32x8xbf16, #tpu.memory_space<vmem>>, vector<32x8xbf16>
    %5 = arith.truncf %3 : vector<8x256xf32> to vector<8x256xbf16>
    %cst_5 = arith.constant dense<0.000000e+00> : vector<32x256xf32>
    %6 = tpu.matmul %4, %5, %cst_5 {dimension_numbers = #tpu.dot_dimension_numbers<[1], [0], [0], [1], [0, 0, 1, 1], [], []>} : vector<32x8xbf16>, vector<8x256xbf16>, vector<32x256xf32> -> vector<32x256xf32>
    %c0_6 = arith.constant 0 : index
    %c0_7 = arith.constant 0 : index
    %7 = vector.load %arg4[%c0_6, %c0_7] : memref<32x1xf32, #tpu.memory_space<vmem>>, vector<32x1xf32>
    %8 = vector.broadcast %7 : vector<32x1xf32> to vector<32x256xf32>
    %9 = arith.addf %6, %8 : vector<32x256xf32>
    %cst_8 = arith.constant 0.707106769 : f32
    %10 = vector.broadcast %cst_8 : f32 to vector<32x256xf32>
    %11 = arith.mulf %9, %10 : vector<32x256xf32>
    %cst_9 = arith.constant 0.000000e+00 : f32
    %12 = vector.broadcast %cst_9 : f32 to vector<32x256xf32>
    %13 = arith.cmpf oge, %11, %12 : vector<32x256xf32>
    %cst_10 = arith.constant 1.000000e+00 : f32
    %cst_11 = arith.constant -1.000000e+00 : f32
    %14 = vector.broadcast %cst_10 : f32 to vector<32x256xf32>
    %15 = vector.broadcast %cst_11 : f32 to vector<32x256xf32>
    %16 = arith.select %13, %14, %15 : vector<32x256xi1>, vector<32x256xf32>
    %17 = math.absf %11 : vector<32x256xf32>
    %cst_12 = arith.constant 0.327591091 : f32
    %18 = vector.broadcast %cst_12 : f32 to vector<32x256xf32>
    %19 = arith.mulf %18, %17 : vector<32x256xf32>
    %cst_13 = arith.constant 1.000000e+00 : f32
    %20 = vector.broadcast %cst_13 : f32 to vector<32x256xf32>
    %21 = arith.addf %20, %19 : vector<32x256xf32>
    %cst_14 = arith.constant 1.000000e+00 : f32
    %22 = vector.broadcast %cst_14 : f32 to vector<32x256xf32>
    %23 = arith.divf %22, %21 : vector<32x256xf32>
    %cst_15 = arith.constant 1.06140542 : f32
    %24 = vector.broadcast %cst_15 : f32 to vector<32x256xf32>
    %25 = arith.mulf %24, %23 : vector<32x256xf32>
    %cst_16 = arith.constant -1.45315206 : f32
    %26 = vector.broadcast %cst_16 : f32 to vector<32x256xf32>
    %27 = arith.addf %25, %26 : vector<32x256xf32>
    %28 = arith.mulf %27, %23 : vector<32x256xf32>
    %cst_17 = arith.constant 1.42141378 : f32
    %29 = vector.broadcast %cst_17 : f32 to vector<32x256xf32>
    %30 = arith.addf %28, %29 : vector<32x256xf32>
    %31 = arith.mulf %30, %23 : vector<32x256xf32>
    %cst_18 = arith.constant -0.284496725 : f32
    %32 = vector.broadcast %cst_18 : f32 to vector<32x256xf32>
    %33 = arith.addf %31, %32 : vector<32x256xf32>
    %34 = arith.mulf %33, %23 : vector<32x256xf32>
    %cst_19 = arith.constant 0.254829586 : f32
    %35 = vector.broadcast %cst_19 : f32 to vector<32x256xf32>
    %36 = arith.addf %34, %35 : vector<32x256xf32>
    %37 = arith.mulf %36, %23 : vector<32x256xf32>
    %cst_20 = arith.constant 0.000000e+00 : f32
    %38 = vector.broadcast %cst_20 : f32 to vector<32x256xf32>
    %39 = arith.subf %38, %17 : vector<32x256xf32>
    %40 = arith.mulf %39, %17 : vector<32x256xf32>
    %41 = math.exp %40 : vector<32x256xf32>
    %42 = arith.mulf %37, %41 : vector<32x256xf32>
    %cst_21 = arith.constant 1.000000e+00 : f32
    %43 = vector.broadcast %cst_21 : f32 to vector<32x256xf32>
    %44 = arith.subf %43, %42 : vector<32x256xf32>
    %45 = arith.mulf %16, %44 : vector<32x256xf32>
    %cst_22 = arith.constant 1.000000e+00 : f32
    %46 = vector.broadcast %cst_22 : f32 to vector<32x256xf32>
    %47 = arith.addf %46, %45 : vector<32x256xf32>
    %48 = arith.mulf %9, %47 : vector<32x256xf32>
    %c0_23 = arith.constant 0 : index
    %c0_24 = arith.constant 0 : index
    %49 = vector.load %arg5[%c0_23, %c0_24] : memref<8x32xbf16, #tpu.memory_space<vmem>>, vector<8x32xbf16>
    %50 = arith.truncf %48 : vector<32x256xf32> to vector<32x256xbf16>
    %cst_25 = arith.constant dense<0.000000e+00> : vector<8x256xf32>
    %51 = tpu.matmul %49, %50, %cst_25 {dimension_numbers = #tpu.dot_dimension_numbers<[1], [0], [0], [1], [0, 0, 1, 1], [], []>} : vector<8x32xbf16>, vector<32x256xbf16>, vector<8x256xf32> -> vector<8x256xf32>
    %c0_26 = arith.constant 0 : index
    %c0_27 = arith.constant 0 : index
    %52 = vector.load %arg6[%c0_26, %c0_27] : memref<8x1xf32, #tpu.memory_space<vmem>>, vector<8x1xf32>
    %53 = vector.broadcast %52 : vector<8x1xf32> to vector<8x256xf32>
    %54 = arith.addf %51, %53 : vector<8x256xf32>
    %55 = arith.addf %3, %54 : vector<8x256xf32>
    %c0_28 = arith.constant 0 : index
    %c0_29 = arith.constant 0 : index
    %56 = vector.load %arg7[%c0_28, %c0_29] : memref<8x256xf32, #tpu.memory_space<vmem>>, vector<8x256xf32>
    tpu.vector_store %arg7[%c0_28, %c0_29], %55 {strides = array<i32>} : memref<8x256xf32, #tpu.memory_space<vmem>>, vector<8x256xf32>,
    return
  }
  func.func @transform_0(%arg0: i32) -> (i32, i32) {
    %c0_i32 = arith.constant 0 : i32
    %c0_i32_0 = arith.constant 0 : i32
    return %arg0, %c0_i32 : i32, i32
  }
  func.func @transform_1(%arg0: i32) -> (i32, i32) {
    %c0_i32 = arith.constant 0 : i32
    %c0_i32_0 = arith.constant 0 : i32
    %c0_i32_1 = arith.constant 0 : i32
    return %c0_i32, %c0_i32_0 : i32, i32
  }
  func.func @transform_2(%arg0: i32) -> (i32, i32) {
    %c0_i32 = arith.constant 0 : i32
    %c0_i32_0 = arith.constant 0 : i32
    %c0_i32_1 = arith.constant 0 : i32
    return %c0_i32, %c0_i32_0 : i32, i32
  }
  func.func @transform_3(%arg0: i32) -> (i32, i32) {
    %c0_i32 = arith.constant 0 : i32
    %c0_i32_0 = arith.constant 0 : i32
    %c0_i32_1 = arith.constant 0 : i32
    return %c0_i32, %c0_i32_0 : i32, i32
  }
  func.func @transform_4(%arg0: i32) -> (i32, i32) {
    %c0_i32 = arith.constant 0 : i32
    %c0_i32_0 = arith.constant 0 : i32
    %c0_i32_1 = arith.constant 0 : i32
    return %c0_i32, %c0_i32_0 : i32, i32
  }
  func.func @transform_5(%arg0: i32) -> (i32, i32) {
    %c0_i32 = arith.constant 0 : i32
    %c0_i32_0 = arith.constant 0 : i32
    %c0_i32_1 = arith.constant 0 : i32
    return %c0_i32, %c0_i32_0 : i32, i32
  }
  func.func @transform_6(%arg0: i32) -> (i32, i32) {
    %c0_i32 = arith.constant 0 : i32
    %c0_i32_0 = arith.constant 0 : i32
    return %arg0, %c0_i32 : i32, i32
  }
}

</mosaic_0001>

<bundles_post_ra>
// kernel: tpu_custom_call.1
= control target key start
LH: loop header
LB: loop body
LE: loop exit
PB: predicated region body
PF: predicated region fallthrough
CT: control target
= control target key end

     0   :  { %11 = vsyncpa [#allocation3], 0  ;;  %s1068_s0 = inlined_call_operand.vmem [shape: f32[8,256], index: 0, kind: input, shape index: {}]   ;;  %s1069_s1 = inlined_call_operand.hbm [shape: bf16[256,256], index: 1, kind: input, shape index: {}]   ;;  %s1070_s2 = inlined_call_operand.vmem [shape: bf16[32,8], index: 2, kind: input, shape index: {}]   ;;  %s1071_s3 = inlined_call_operand.vmem [shape: f32[32,1], index: 3, kind: input, shape index: {}]   ;;  %s1072_s4 = inlined_call_operand.vmem [shape: bf16[8,32], index: 4, kind: input, shape index: {}]   ;;  %s1073_s5 = inlined_call_operand.vmem [shape: f32[8,1], index: 5, kind: input, shape index: {}]   ;;  %s1074_s6 = inlined_call_operand.hbm [shape: f32[8,256], index: 6, kind: output, shape index: {}]  }
   0x1   :  { %12 = vsyncpa [#allocation4], 0  ;;  %s838_s21 = smov [#allocation2]  }
   0x2   :  { %s20_s22 = sshll.u32 %s838_s21, 4  ;;  %s21_s22 = int_to_ptr.vmem [resolvable:$true] %s20_s22 }
   0x3   :  { %s802_s23 = scalar_lea.vmem %s21_s22, 4096  ;;  %p807_p1 = scmp.lt.s32.totalorder %s21_s22, %s21_s22 }
   0x4   :  { %p803_p0 = scmp.ne.s32.totalorder %s21_s22, %s802_s23  ;;  %p808_p2 = scmp.lt.s32.totalorder %s802_s23, %s802_s23 }
   0x6   :  { %p809_p3 = por %p808_p2, %p807_p1 }
   0x8   :  { %p810_p4 = pnand %p809_p3, %p803_p0 }
   0xa   :  { %813 = shalt.err (!%p810_p4)
}
   0xb   :  { %s839_s24 = smov 128   ;;  %s840_s25 = smov 8  }
   0xc   :  { %26 = dma.hbm_to_vmem [thread:$0]  %s1069_s1, 4096, %s21_s22, [#allocation3], %s839_s24, %s839_s24, %s840_s25  }
   0xd   :  { %834 = dma.done.wait [#allocation3], 4096  }
   0xe   :  { %835 = vsyncadd [#allocation3], 4294963200  ;;  %v712_v0 = vld [vmem:[#allocation2 + $0x74] ss:$8 sps:$4 sm:$0xff]   ;;  %v714_v1 = vld [vmem:[#allocation2 + $0x70] ss:$8 sps:$4 sm:$0xff]  }
   0xf   :  { %235 = vmatprep.subr.bf16.mxu0 %v712_v0  ;;  %v715_v2 = vld [vmem:[#allocation2 + $0x64] ss:$8 sps:$4 sm:$0xff]   ;;  %v717_v3 = vld [vmem:[#allocation2 + $0x60] ss:$8 sps:$4 sm:$0xff]   ;;  %v718_v4 = vld [vmem:[#allocation2 + $0x54] ss:$8 sps:$4 sm:$0xff]  }
  0x10   :  { %236 = vmatpush1.bf16.msra.mxu0 %v714_v1  ;;  %v720_v5 = vld [vmem:[#allocation2 + $0x50] ss:$8 sps:$4 sm:$0xff]   ;;  %v721_v6 = vld [vmem:[#allocation2 + $0x44] ss:$8 sps:$4 sm:$0xff]   ;;  %v723_v7 = vld [vmem:[#allocation2 + $0x40] ss:$8 sps:$4 sm:$0xff]  }
  0x11   :  { %237 = vmatprep.subr.bf16.mxu0 %v715_v2  ;;  %v724_v8 = vld [vmem:[#allocation2 + $0x34] ss:$8 sps:$4 sm:$0xff]   ;;  %v726_v9 = vld [vmem:[#allocation2 + $0x30] ss:$8 sps:$4 sm:$0xff]   ;;  %v727_v10 = vld [vmem:[#allocation2 + $0x24] ss:$8 sps:$4 sm:$0xff]  }
  0x12   :  { %v729_v11 = vld [vmem:[#allocation2 + $0x20] ss:$8 sps:$4 sm:$0xff]   ;;  %v730_v12 = vld [vmem:[#allocation2 + $0x14] ss:$8 sps:$4 sm:$0xff]   ;;  %v732_v15 = vld [vmem:[#allocation2 + $0x10] ss:$8 sps:$4 sm:$0xff]  }
  0x13   :  { %v40_v13 = vld [vmem:[%s1068_s0 + $0x8] sm:$0xff]  ;;  %v736_v18 = vld [vmem:[#allocation2 + $0xf4] ss:$8 sps:$4 sm:$0xff]   ;;  %v738_v19 = vld [vmem:[#allocation2 + $0xf0] ss:$8 sps:$4 sm:$0xff]   ;;  %v841_v36 = vmov 0  }
  0x14   :  { %238 = vmatpush1.bf16.msra.mxu0 %v717_v3  ;;  %v42_v14 = vpack.c.bf16 %v40_v13, %v40_v13  ;;  %v733_v16 = vld [vmem:[#allocation2 + $0x4] ss:$8 sps:$4 sm:$0xff]   ;;  %v735_v17 = vld [vmem:[#allocation2] ss:$8 sps:$4 sm:$0xff]   ;;  %v742_v22 = vld [vmem:[#allocation2 + $0xd4] ss:$8 sps:$4 sm:$0xff]   ;;  %362 = vmatprep.mubr.bf16.mxu1 %v841_v36 }
  0x15   :  { %239 = vmatprep.subr.bf16.mxu0 %v718_v4  ;;  %v739_v20 = vld [vmem:[#allocation2 + $0xe4] ss:$8 sps:$4 sm:$0xff]   ;;  %v741_v21 = vld [vmem:[#allocation2 + $0xe0] ss:$8 sps:$4 sm:$0xff]   ;;  %v744_v23 = vld [vmem:[#allocation2 + $0xd0] ss:$8 sps:$4 sm:$0xff]   ;;  %711 = vset.pattern.permute.xlu1 %v841_v36 }
  0x16   :  { %267 = vmatprep.mubr.bf16.mxu0 %v42_v14  ;;  %v745_v24 = vld [vmem:[#allocation2 + $0xc4] ss:$8 sps:$4 sm:$0xff]   ;;  %v747_v25 = vld [vmem:[#allocation2 + $0xc0] ss:$8 sps:$4 sm:$0xff]   ;;  %v748_v26 = vld [vmem:[#allocation2 + $0xb4] ss:$8 sps:$4 sm:$0xff]   ;;  %710 = vset.pattern.permute.xlu0 %v841_v36 }
  0x17   :  { %v750_v27 = vld [vmem:[#allocation2 + $0xb0] ss:$8 sps:$4 sm:$0xff]   ;;  %v751_v28 = vld [vmem:[#allocation2 + $0xa4] ss:$8 sps:$4 sm:$0xff]   ;;  %v753_v29 = vld [vmem:[#allocation2 + $0xa0] ss:$8 sps:$4 sm:$0xff]  }
  0x18   :  { %240 = vmatpush1.bf16.msra.mxu0 %v720_v5  ;;  %v754_v30 = vld [vmem:[#allocation2 + $0x94] ss:$8 sps:$4 sm:$0xff]   ;;  %v756_v31 = vld [vmem:[#allocation2 + $0x90] ss:$8 sps:$4 sm:$0xff]   ;;  %v757_v32 = vld [vmem:[#allocation2 + $0x84] ss:$8 sps:$4 sm:$0xff]  }
  0x19   :  { %241 = vmatprep.subr.bf16.mxu0 %v721_v6  ;;  %v759_v33 = vld [vmem:[#allocation2 + $0x80] ss:$8 sps:$4 sm:$0xff]   ;;  %v284_v38 = vld [vmem:[%s1071_s3 + $0x10] sm:$0xff]  ;;  %v285_v40 = vld [vmem:[%s1071_s3 + $0x18] sm:$0xff]  ;;  %vm323_vm0 = vcmask 1043456   ;;  %vm316_vm1 = vcmask 64512  }
  0x1a   :  { %v39_v34 = vld [vmem:[%s1068_s0] sm:$0xff]  ;;  %298 = vperm.xlu0 %710, %v284_v38   ;;  %v283_v39 = vld [vmem:[%s1071_s3 + $0x8] sm:$0xff]  ;;  %vm602_vm10 = vcmask 261120   ;;  %s843_s19 = smov [#allocation5]  }
  0x1b   :  { %v41_v35 = vpack.c.bf16 %v39_v34, %v39_v34  ;;  %v282_v37 = vld [vmem:[%s1071_s3] sm:$0xff]  ;;  %v761_v50 = vld [vmem:[%s1070_s2 + $0x8] sm:$0xff]   ;;  %s657_s20 = sshll.u32 %s843_s19, 4  ;;  %s658_s20 = int_to_ptr.vmem [resolvable:$true] %s657_s20 }
  0x1c   :  { %242 = vmatpush1.bf16.msra.mxu0 %v723_v7  ;;  %288 = vperm.xlu1 %711, %v282_v37   ;;  %v596_v41 = vld [vmem:[%s1073_s5] sm:$0xff]  ;;  %s814_s21 = scalar_lea.vmem %s658_s20, 256  ;;  %p819_p6 = scmp.lt.s32.totalorder %s658_s20, %s658_s20 }
  0x1d   :  { %243 = vmatprep.subr.bf16.mxu0 %v724_v8  ;;  %v760_v48 = vld [vmem:[%s1070_s2] sm:$0xff]   ;;  %p815_p5 = scmp.ne.s32.totalorder %s658_s20, %s814_s21  ;;  %p820_p7 = scmp.lt.s32.totalorder %s814_s21, %s814_s21 }
  0x1e   :  { %303 = vperm.xlu0 %710, %v285_v40  }
  0x1f   :  { %p821_p8 = por %p820_p7, %p819_p6 }
  0x20   :  { %244 = vmatpush1.bf16.msra.mxu0 %v726_v9  ;;  %293 = vperm.xlu1 %711, %v283_v39  }
  0x21   :  { %245 = vmatprep.subr.bf16.mxu0 %v727_v10  ;;  %p822_p9 = pnand %p821_p8, %p815_p5 }
  0x22   :  { %599 = vperm.xlu0 %710, %v596_v41  }
  0x24   :  { %246 = vmatpush1.bf16.msra.mxu0 %v729_v11 }
  0x25   :  { %247 = vmatprep.subr.bf16.mxu0 %v730_v12 }
  0x28   :  { %248 = vmatpush1.bf16.msra.mxu0 %v732_v15 }
  0x29   :  { %249 = vmatprep.subr.bf16.mxu0 %v733_v16 }
  0x2c   :  { %250 = vmatpush1.bf16.msra.mxu0 %v735_v17 }
  0x2d   :  { %251 = vmatprep.subr.bf16.mxu0 %v736_v18 }
  0x30   :  { %252 = vmatpush2.bf16.msra.mxu0 %v738_v19 }
  0x31   :  { %253 = vmatprep.subr.bf16.mxu0 %v739_v20 }
  0x34   :  { %254 = vmatpush2.bf16.msra.mxu0 %v741_v21 }
  0x35   :  { %255 = vmatprep.subr.bf16.mxu0 %v742_v22 }
  0x38   :  { %256 = vmatpush2.bf16.msra.mxu0 %v744_v23 }
  0x39   :  { %257 = vmatprep.subr.bf16.mxu0 %v745_v24 }
  0x3c   :  { %258 = vmatpush2.bf16.msra.mxu0 %v747_v25 }
  0x3d   :  { %259 = vmatprep.subr.bf16.mxu0 %v748_v26 }
  0x40   :  { %260 = vmatpush2.bf16.msra.mxu0 %v750_v27 }
  0x41   :  { %261 = vmatprep.subr.bf16.mxu0 %v751_v28 }
  0x44   :  { %262 = vmatpush2.bf16.msra.mxu0 %v753_v29 }
  0x45   :  { %263 = vmatprep.subr.bf16.mxu0 %v754_v30 }
  0x48   :  { %264 = vmatpush2.bf16.msra.mxu0 %v756_v31 }
  0x49   :  { %265 = vmatprep.subr.bf16.mxu0 %v757_v32 }
  0x4c   :  { %266 = vmatpush2.bf16.msra.mxu0 %v759_v33 }
  0x4f   :  { %268 = vmatmul.mubr.bf16.vlgmr.msra.gmra.mxu0 %v41_v35 }
  0x95   :  { %v299_v5 = vpop.permute.xlu0 %298 }
  0x97   :  { %v289_v51 = vpop.permute.xlu1 %288 }
  0x99   :  { %v304_v20 = vpop.permute.xlu0 %303 }
  0x9b   :  { %v294_v55 = vpop.permute.xlu1 %293 }
 0x10f   :  { %v903_v42 = vpop.f32.mrf.mxu0 }
 0x110   :  { %v280_v43 = vpack.c.bf16 %v903_v42, %v903_v42 }
 0x111   :  { %v907_v44 = vpop.f32.mrf.mxu0 }
 0x112   :  { %v281_v45 = vpack.c.bf16 %v907_v44, %v907_v44  ;;  %v325_v47 = vsel %vm323_vm0, %v280_v43, 0 }
 0x113   :  { %v273_v46 = vpop.f32.mrf.mxu0 }
 0x114   :  { %700 = vmatprep.subr.msk.bf16.mxu1 %vm323_vm0, %v281_v45 }
 0x115   :  { %v274_v49 = vpop.f32.mrf.mxu0  ;;  %345 = vmatpush1.bf16.msra.mxu1 %v325_v47 }
 0x118   :  { %701 = vmatmul.mubr.msk.bf16.vlgmr.msra.gmra.mxu1 %vm316_vm1, %v760_v48 }
 0x119   :  { %372 = vmatprep.mubr.bf16.mxu1 %v841_v36 }
 0x120   :  { %702 = vmatmul.mubr.msk.bf16.gmra.mxu1 %vm316_vm1, %v761_v50 }
 0x121   :  { %638 = vmatprep.mubr.bf16.mxu1 %v841_v36 }
 0x1d8   :  { %v364_v52 = vpop.f32.mrf.mxu1 }
 0x1d9   :  { %v917_v53 = vadd.f32 %v364_v52, %v289_v51 }
 0x1da   :  { %v366_v54 = vpop.f32.mrf.mxu1 }
 0x1db   :  { %v920_v56 = vmul.f32 0.70710677, %v917_v53  ;;  %v922_v57 = vadd.f32 %v366_v54, %v289_v51 }
 0x1dc   :  { %v368_v58 = vpop.f32.mrf.mxu1 }
 0x1dd   :  { %v925_v59 = vand.u32 2147483647, %v920_v56  ;;  %v928_v60 = vmul.f32 0.70710677, %v922_v57  ;;  %v930_v61 = vadd.f32 %v368_v58, %v294_v55  ;;  %vm391_vm9 = vcmp.ge.f32.partialorder %v920_v56, 0.0 }
 0x1de   :  { %v370_v62 = vpop.f32.mrf.mxu1 }
 0x1df   :  { %v415_v63 = vmul.f32 0.3275911, %v925_v59  ;;  %v408_v0 = vand.u32 2147483647, %v928_v60  ;;  %v935_v1 = vmul.f32 0.70710677, %v930_v61  ;;  %v937_v2 = vadd.f32 %v370_v62, %v294_v55 }
 0x1e0   :  { %v374_v3 = vpop.f32.mrf.mxu1  ;;  %v519_v48 = vsub.f32 0.0, %v925_v59  ;;  %vm392_vm2 = vcmp.ge.f32.partialorder %v928_v60, 0.0 }
 0x1e1   :  { %v423_v4 = vadd.f32 1.0, %v415_v63  ;;  %v416_v6 = vmul.f32 0.3275911, %v408_v0  ;;  %v940_v7 = vand.u32 2147483647, %v935_v1  ;;  %v945_v9 = vadd.f32 %v374_v3, %v299_v5 }
 0x1e2   :  { %v943_v8 = vmul.f32 0.70710677, %v937_v2  ;;  %v376_v10 = vpop.f32.mrf.mxu1  ;;  %v520_v37 = vsub.f32 0.0, %v408_v0  ;;  %vm393_vm7 = vcmp.ge.f32.partialorder %v935_v1, 0.0 }
 0x1e3   :  { %762 = vrcp.f32 %v423_v4  ;;  %v424_v11 = vadd.f32 1.0, %v416_v6  ;;  %v417_v12 = vmul.f32 0.3275911, %v940_v7  ;;  %v950_v15 = vmul.f32 0.70710677, %v945_v9 }
 0x1e4   :  { %v410_v13 = vand.u32 2147483647, %v943_v8  ;;  %v378_v16 = vpop.f32.mrf.mxu1  ;;  %v952_v18 = vadd.f32 %v376_v10, %v299_v5  ;;  %v528_v51 = vmul.f32 %v520_v37, %v408_v0  ;;  %v527_v4 = vmul.f32 %v519_v48, %v925_v59 }
 0x1e5   :  { %764 = vrcp.f32 %v424_v11  ;;  %v425_v14 = vadd.f32 1.0, %v417_v12  ;;  %v411_v19 = vand.u32 2147483647, %v950_v15  ;;  %v958_v24 = vadd.f32 %v378_v16, %v304_v20 }
 0x1e6   :  { %v418_v17 = vmul.f32 0.3275911, %v410_v13  ;;  %v956_v22 = vmul.f32 0.70710677, %v952_v18  ;;  %v380_v25 = vpop.f32.mrf.mxu1  ;;  %v522_v41 = vsub.f32 0.0, %v410_v13  ;;  %v521_v5 = vsub.f32 0.0, %v940_v7 }
 0x1e7   :  { %766 = vrcp.f32 %v425_v14  ;;  %v419_v23 = vmul.f32 0.3275911, %v411_v19  ;;  %v962_v28 = vmul.f32 0.70710677, %v958_v24  ;;  %v964_v30 = vadd.f32 %v380_v25, %v304_v20 }
 0x1e8   :  { %v426_v21 = vadd.f32 1.0, %v418_v17  ;;  %v412_v26 = vand.u32 2147483647, %v956_v22  ;;  %v530_v55 = vmul.f32 %v522_v41, %v410_v13  ;;  %v523_v3 = vsub.f32 0.0, %v411_v19 }
 0x1e9   :  { %v427_v27 = vadd.f32 1.0, %v419_v23  ;;  %v413_v31 = vand.u32 2147483647, %v962_v28  ;;  %v968_v33 = vmul.f32 0.70710677, %v964_v30  ;;  %vm394_vm3 = vcmp.ge.f32.partialorder %v943_v8, 0.0 }
 0x1ea   :  { %768 = vrcp.f32 %v426_v21  ;;  %v420_v29 = vmul.f32 0.3275911, %v412_v26  ;;  %v524_v49 = vsub.f32 0.0, %v412_v26  ;;  %v537_v11 = vmul.f32 1.442695, %v528_v51 }
 0x1eb   :  { %770 = vrcp.f32 %v427_v27  ;;  %v421_v35 = vmul.f32 0.3275911, %v413_v31  ;;  %v974_v39 = vand.u32 2147483647, %v968_v33  ;;  %v525_v13 = vsub.f32 0.0, %v413_v31 }
 0x1ec   :  { %v428_v32 = vadd.f32 1.0, %v420_v29  ;;  %v532_v10 = vmul.f32 %v524_v49, %v412_v26  ;;  %v541_v21 = vmul.f32 1.442695, %v530_v55  ;;  %v531_v59 = vmul.f32 %v523_v3, %v411_v19 }
 0x1ed   :  { %v429_v38 = vadd.f32 1.0, %v421_v35  ;;  %v422_v45 = vmul.f32 0.3275911, %v974_v39  ;;  %v535_v25 = vmul.f32 1.442695, %v527_v4  ;;  %v529_v27 = vmul.f32 %v521_v5, %v940_v7 }
 0x1ee   :  { %772 = vrcp.f32 %v428_v32  ;;  %v545_v29 = vmul.f32 1.442695, %v532_v10  ;;  %v533_v37 = vmul.f32 %v525_v13, %v413_v31  ;;  %vm395_vm4 = vcmp.ge.f32.partialorder %v950_v15, 0.0 }
 0x1ef   :  { %774 = vrcp.f32 %v429_v38  ;;  %v430_v54 = vadd.f32 1.0, %v422_v45  ;;  %v526_v45 = vsub.f32 0.0, %v974_v39  ;;  %v539_v49 = vmul.f32 1.442695, %v529_v27 }
 0x1f0   :  { %v970_v34 = vpop.eup %762  ;;  %v547_v55 = vmul.f32 1.442695, %v533_v37  ;;  %vm397_vm5 = vcmp.ge.f32.partialorder %v962_v28, 0.0  ;;  %vm396_vm6 = vcmp.ge.f32.partialorder %v956_v22, 0.0  ;;  %vm398_vm8 = vcmp.ge.f32.partialorder %v968_v33, 0.0 }
 0x1f1   :  { %v447_v36 = vmul.f32 1.0614054, %v970_v34  ;;  %776 = vrcp.f32 %v430_v54  ;;  %v534_v4 = vmul.f32 %v526_v45, %v974_v39 }
 0x1f2   :  { %v976_v40 = vpop.eup %764  ;;  %778 = vpow2.f32 %v537_v11 }
 0x1f3   :  { %v448_v43 = vmul.f32 1.0614054, %v976_v40  ;;  %v455_v47 = vadd.f32 -1.4531521, %v447_v36  ;;  %780 = vpow2.f32 %v541_v21 }
 0x1f4   :  { %v980_v46 = vpop.eup %766  ;;  %782 = vpow2.f32 %v545_v29 }
 0x1f5   :  { %v456_v50 = vadd.f32 -1.4531521, %v448_v43  ;;  %v449_v52 = vmul.f32 1.0614054, %v980_v46  ;;  %v463_v0 = vmul.f32 %v970_v34, %v455_v47  ;;  %v543_v47 = vmul.f32 1.442695, %v531_v59 }
 0x1f7   :  { %v984_v58 = vpop.eup %768  ;;  %v464_v62 = vmul.f32 %v976_v40, %v456_v50  ;;  %v457_v63 = vadd.f32 -1.4531521, %v449_v52  ;;  %v471_v35 = vadd.f32 1.4214138, %v463_v0  ;;  %784 = vpow2.f32 %v543_v47 }
 0x1f8   :  { %v450_v6 = vmul.f32 1.0614054, %v984_v58  ;;  %v992_v14 = vpop.eup %770  ;;  %786 = vpow2.f32 %v539_v49 }
 0x1f9   :  { %v465_v12 = vmul.f32 %v980_v46, %v457_v63  ;;  %v472_v16 = vadd.f32 1.4214138, %v464_v62  ;;  %v451_v23 = vmul.f32 1.0614054, %v992_v14  ;;  %v479_v31 = vmul.f32 %v970_v34, %v471_v35 }
 0x1fa   :  { %v458_v17 = vadd.f32 -1.4531521, %v450_v6  ;;  %788 = vpow2.f32 %v547_v55 }
 0x1fb   :  { %v473_v20 = vadd.f32 1.4214138, %v465_v12  ;;  %v997_v32 = vpop.eup %772  ;;  %v459_v36 = vadd.f32 -1.4531521, %v451_v23  ;;  %v480_v38 = vmul.f32 %v976_v40, %v472_v16  ;;  %v487_v13 = vadd.f32 -0.28449672, %v479_v31 }
 0x1fc   :  { %v466_v26 = vmul.f32 %v984_v58, %v458_v17  ;;  %v452_v43 = vmul.f32 1.0614054, %v997_v32  ;;  %v1004_v48 = vpop.eup %774  ;;  %v549_v23 = vmul.f32 1.442695, %v534_v4  ;;  %790 = vpow2.f32 %v535_v25 }
 0x1fd   :  { %v481_v19 = vmul.f32 %v980_v46, %v473_v20  ;;  %v467_v7 = vmul.f32 %v992_v14, %v459_v36  ;;  %v453_v54 = vmul.f32 1.0614054, %v1004_v48  ;;  %v488_v62 = vadd.f32 -0.28449672, %v480_v38 }
 0x1fe   :  { %v474_v41 = vadd.f32 1.4214138, %v466_v26  ;;  %v460_v51 = vadd.f32 -1.4531521, %v452_v43  ;;  %v1012_v0 = vpop.eup %776  ;;  %v495_v37 = vmul.f32 %v970_v34, %v487_v13  ;;  %792 = vpow2.f32 %v549_v23 }
 0x1ff   :  { %v475_v52 = vadd.f32 1.4214138, %v467_v7  ;;  %v489_v5 = vadd.f32 -0.28449672, %v481_v19  ;;  %v461_v10 = vadd.f32 -1.4531521, %v453_v54  ;;  %v496_v20 = vmul.f32 %v976_v40, %v488_v62  ;;  %v779_v43 = vpop.eup %778 }
 0x200   :  { %v482_v50 = vmul.f32 %v984_v58, %v474_v41  ;;  %v468_v3 = vmul.f32 %v997_v32, %v460_v51  ;;  %v454_v21 = vmul.f32 1.0614054, %v1012_v0  ;;  %v781_v49 = vpop.eup %780  ;;  %v503_v54 = vadd.f32 0.2548296, %v495_v37 }
 0x201   :  { %v483_v6 = vmul.f32 %v992_v14, %v475_v52  ;;  %v469_v17 = vmul.f32 %v1004_v48, %v461_v10  ;;  %v497_v59 = vmul.f32 %v980_v46, %v489_v5  ;;  %v504_v45 = vadd.f32 0.2548296, %v496_v20  ;;  %v783_v52 = vpop.eup %782 }
 0x202   :  { %v490_v63 = vadd.f32 -0.28449672, %v482_v50  ;;  %v476_v12 = vadd.f32 1.4214138, %v468_v3  ;;  %v462_v36 = vadd.f32 -1.4531521, %v454_v21 }
 0x203   :  { %v491_v16 = vadd.f32 -0.28449672, %v483_v6  ;;  %v477_v26 = vadd.f32 1.4214138, %v469_v17  ;;  %v505_v25 = vadd.f32 0.2548296, %v497_v59 }
 0x204   :  { %v498_v11 = vmul.f32 %v984_v58, %v490_v63  ;;  %v484_v39 = vmul.f32 %v997_v32, %v476_v12  ;;  %v470_v7 = vmul.f32 %v1012_v0, %v462_v36  ;;  %v512_v63 = vmul.f32 %v976_v40, %v504_v45  ;;  %v785_v10 = vpop.eup %784 }
 0x205   :  { %v499_v27 = vmul.f32 %v992_v14, %v491_v16  ;;  %v485_v41 = vmul.f32 %v1004_v48, %v477_v26  ;;  %v513_v5 = vmul.f32 %v980_v46, %v505_v25  ;;  %v787_v13 = vpop.eup %786  ;;  %v511_v16 = vmul.f32 %v970_v34, %v503_v54 }
 0x206   :  { %v506_v29 = vadd.f32 0.2548296, %v498_v11  ;;  %v492_v35 = vadd.f32 -0.28449672, %v484_v39  ;;  %v478_v31 = vadd.f32 1.4214138, %v470_v7  ;;  %v552_v40 = vmul.f32 %v779_v43, %v512_v63 }
 0x207   :  { %v507_v38 = vadd.f32 0.2548296, %v499_v27  ;;  %v493_v47 = vadd.f32 -0.28449672, %v485_v41  ;;  %v789_v20 = vpop.eup %788  ;;  %v553_v46 = vmul.f32 %v787_v13, %v513_v5 }
 0x208   :  { %v500_v19 = vmul.f32 %v997_v32, %v492_v35  ;;  %v514_v50 = vmul.f32 %v984_v58, %v506_v29  ;;  %v486_v4 = vmul.f32 %v1012_v0, %v478_v31  ;;  %v560_v29 = vsub.f32 1.0, %v552_v40 }
 0x209   :  { %v515_v55 = vmul.f32 %v992_v14, %v507_v38  ;;  %v501_v62 = vmul.f32 %v1004_v48, %v493_v47  ;;  %v791_v21 = vpop.eup %790  ;;  %v842_v35 = vmov -1.0   ;;  %v561_v41 = vsub.f32 1.0, %v553_v46 }
 0x20a   :  { %v508_v51 = vadd.f32 0.2548296, %v500_v19  ;;  %v554_v11 = vmul.f32 %v781_v49, %v514_v50  ;;  %v494_v12 = vadd.f32 -0.28449672, %v486_v4  ;;  %v551_v59 = vmul.f32 %v791_v21, %v511_v16 }
 0x20b   :  { %v509_v6 = vadd.f32 0.2548296, %v501_v62  ;;  %v555_v17 = vmul.f32 %v785_v10, %v515_v55  ;;  %v402_v36 = vsel %vm394_vm3, 1.0, %v842_v35  ;;  %v405_v37 = vsel %vm397_vm5, 1.0, %v842_v35  ;;  %v793_v38 = vpop.eup %792 }
 0x20c   :  { %v516_v3 = vmul.f32 %v997_v32, %v508_v51  ;;  %v502_v32 = vmul.f32 %v1012_v0, %v494_v12  ;;  %v562_v23 = vsub.f32 1.0, %v554_v11  ;;  %v403_v22 = vsel %vm395_vm4, 1.0, %v842_v35 }
 0x20d   :  { %v517_v14 = vmul.f32 %v1004_v48, %v509_v6  ;;  %v563_v27 = vsub.f32 1.0, %v555_v17  ;;  %v404_v43 = vsel %vm396_vm6, 1.0, %v842_v35  ;;  %v559_v47 = vsub.f32 1.0, %v551_v59 }
 0x20e   :  { %v556_v58 = vmul.f32 %v783_v52, %v516_v3  ;;  %v510_v48 = vadd.f32 0.2548296, %v502_v32  ;;  %v570_v19 = vmul.f32 %v562_v23, %v402_v36  ;;  %v400_v8 = vsel %vm392_vm2, 1.0, %v842_v35 }
 0x20f   :  { %v557_v39 = vmul.f32 %v789_v20, %v517_v14  ;;  %v571_v49 = vmul.f32 %v563_v27, %v403_v22  ;;  %v401_v50 = vsel %vm393_vm7, 1.0, %v842_v35  ;;  %v406_v52 = vsel %vm398_vm8, 1.0, %v842_v35 }
 0x210   :  { %v564_v34 = vsub.f32 1.0, %v556_v58  ;;  %v518_v28 = vmul.f32 %v1012_v0, %v510_v48  ;;  %v568_v0 = vmul.f32 %v560_v29, %v400_v8  ;;  %v569_v51 = vmul.f32 %v561_v41, %v401_v50 }
 0x211   :  { %v565_v26 = vsub.f32 1.0, %v557_v39  ;;  %v399_v54 = vsel %vm391_vm9, 1.0, %v842_v35  ;;  %v578_v55 = vadd.f32 1.0, %v570_v19  ;;  %v579_v3 = vadd.f32 1.0, %v571_v49 }
 0x212   :  { %v572_v7 = vmul.f32 %v564_v34, %v404_v43  ;;  %v558_v25 = vmul.f32 %v793_v38, %v518_v28  ;;  %v567_v63 = vmul.f32 %v559_v47, %v399_v54  ;;  %v576_v56 = vadd.f32 1.0, %v568_v0 }
 0x213   :  { %v573_v45 = vmul.f32 %v565_v26, %v405_v37  ;;  %v577_v5 = vadd.f32 1.0, %v569_v51  ;;  %v586_v6 = vmul.f32 %v578_v55, %v937_v2  ;;  %v587_v58 = vmul.f32 %v579_v3, %v945_v9  ;;  %v600_v9 = vpop.permute.xlu0 %599 }
 0x214   :  { %v566_v15 = vsub.f32 1.0, %v558_v25  ;;  %v580_v62 = vadd.f32 1.0, %v572_v7  ;;  %v575_v11 = vadd.f32 1.0, %v567_v63  ;;  %v584_v12 = vmul.f32 %v576_v56, %v922_v57 }
 0x215   :  { %v581_v31 = vadd.f32 1.0, %v573_v45  ;;  %v585_v16 = vmul.f32 %v577_v5, %v930_v61 }
 0x216   :  { %v574_v33 = vmul.f32 %v566_v15, %v406_v52  ;;  %v588_v1 = vmul.f32 %v580_v62, %v952_v18  ;;  %v593_v14 = vpack.c.bf16 %v586_v6, %v584_v12  ;;  %v583_v20 = vmul.f32 %v575_v11, %v917_v53  ;;  %v591_v18 = vld [vmem:[%s1072_s4] sm:$0xf] }
 0x217   :  { %v589_v60 = vmul.f32 %v581_v31, %v958_v24 }
 0x218   :  { %v582_v4 = vadd.f32 1.0, %v574_v33  ;;  %v592_v2 = vpack.c.bf16 %v585_v16, %v583_v20 }
 0x219   :  { %v594_v17 = vpack.c.bf16 %v589_v60, %v587_v58 }
 0x21a   :  { %v590_v10 = vmul.f32 %v582_v4, %v964_v30 }
 0x21c   :  { %v595_v13 = vpack.c.bf16 %v590_v10, %v588_v1 }
 0x21e   :  { %618 = vmatprep.subr.bf16.mxu1 %v595_v13 }
 0x21f   :  { %619 = vmatpush1.bf16.msra.mxu1 %v594_v17 }
 0x220   :  { %620 = vmatprep.subr.bf16.mxu1 %v593_v14 }
 0x223   :  { %621 = vmatpush1.bf16.msra.mxu1 %v592_v2 }
 0x226   :  { %703 = vmatmul.mubr.msk.bf16.vlgmr.msra.gmra.mxu1 %vm602_vm10, %v591_v18 }
 0x2e6   :  { %v640_v57 = vpop.f32.mrf.mxu1 }
 0x2e7   :  { %v641_v24 = vadd.f32 %v640_v57, %v600_v9 }
 0x2e8   :  { %v642_v30 = vpop.f32.mrf.mxu1 }
 0x2e9   :  { %v647_v61 = vadd.f32 %v641_v24, %v903_v42  ;;  %v643_v40 = vadd.f32 %v642_v30, %v600_v9 }
 0x2ea   :  { %v644_v53 = vpop.f32.mrf.mxu1 }
 0x2eb   :  { %649 = vst [vmem:[#allocation5] sm:$0xff] %v647_v61  ;;  %v648_v32 = vadd.f32 %v643_v40, %v907_v44 }
 0x2ec   :  { %v645_v46 = vpop.f32.mrf.mxu1 }
 0x2ed   :  { %650 = vst [vmem:[#allocation5 + $0x8] sm:$0xff] %v648_v32 }
 0x2ee   :  { %825 = shalt.err (!%p822_p9)
}
 0x2ef   :  { %660 = dma.vmem_to_hbm [thread:$0]  %s658_s20, 256, %s1074_s6, [#allocation4]  }
 0x2f0   :  { %836 = dma.done.wait [#allocation4], 256  }
 0x2f1   :  { %837 = vsyncadd [#allocation4], 4294967040 }
 0x2f2   :  { %664 = vsyncpa [#allocation3], 1 }
 0x2f3   :  { %665 = vsyncpa [#allocation4], 1 }

</bundles_post_ra>
